<compile_context>
chip_gen: v6e
topology: v6e:2x2x1
jax: 0.10.0
libtpu: 0.0.40
codegen_flags: <defaults>
</compile_context>

<pallas_src>
import functools

import numpy as np
import jax
import jax.numpy as jnp
from jax.experimental import pallas as pl
from jax.experimental.pallas import tpu as pltpu


# ----------------------------------------------------------------------------
# Fused kernel: BN(eval)+ReLU (f32 VPU) -> 2x2 avg pool (bf16 MXU matmul)
#               -> gate-folded 1x1 conv (bf16 MXU matmul).
# ----------------------------------------------------------------------------
def _fused_transition_kernel(x_ref, bn_ref, w_ref, p_ref, o_ref):
    # x_ref : (G, C_in, L)    G images, L = 2*TR*W flat input pixels (native dtype)
    # bn_ref: (2, C_in, 1)    f32 [scale; shift] of the folded eval-mode BatchNorm
    # w_ref : (C_out, C_in)   bf16 1x1-conv weight with the per-channel gate folded in
    # p_ref : (L, Lp)         bf16 2x2 average-pool matrix (entries 0.25), Lp = L//4
    # o_ref : (G, C_out, Lp)  pooled conv output (native dtype), lane-dense flat spatial
    scale = bn_ref[0]                      # (C_in, 1) f32, broadcast along lanes
    shift = bn_ref[1]
    w = w_ref[...]                         # (C_out, C_in) bf16, resident
    p = p_ref[...]                         # (L, Lp)      bf16, resident
    for g in range(x_ref.shape[0]):        # static unroll over the image block
        a = jnp.maximum(x_ref[g].astype(jnp.float32) * scale + shift, 0.0)   # VPU, f32
        # Pool BEFORE the conv (they commute) -> conv matmul is 4x smaller.
        pooled = jnp.dot(a.astype(jnp.bfloat16), p,
                         preferred_element_type=jnp.float32)                 # (C_in, Lp)
        y = jnp.dot(w, pooled.astype(jnp.bfloat16),
                    preferred_element_type=jnp.float32)                      # (C_out, Lp)
        o_ref[g] = y.astype(o_ref.dtype)


# ----------------------------------------------------------------------------
# Tiling helpers.
# ----------------------------------------------------------------------------
def _divisors(n):
    return [d for d in range(1, n + 1) if n % d == 0]


def _tpu_vmem_bytes():
    try:
        return int(pltpu.get_tpu_info().vmem_capacity_bytes)
    except Exception:
        return 64 << 20   # conservative (v7x-sized) fallback


def _pick_pooled_rows(Ho, Wo):
    """Pooled rows per grid step (TR).

    Smallest divisor of Ho whose pooled lane width TR*Wo is a multiple of 128:
    lane-dense (unmasked) stores, and a small block-diagonal pool matrix.
    Falls back to the full feature map (layout-legal because the block then
    equals the full array dim) when no divisor qualifies.
    """
    for tr in sorted(_divisors(Ho)):
        if (tr * Wo) % 128 == 0:
            return tr
    return Ho


def _pick_images_per_step(N, per_image_bytes, resident_bytes, budget_bytes):
    """Images per grid step (G), double-buffering-aware; never exceeds budget."""
    for g in sorted(_divisors(N), reverse=True):
        if g <= 8 and resident_bytes + 2 * g * per_image_bytes <= budget_bytes:
            return g
    return 1


@functools.lru_cache(maxsize=None)
def _pool_matrix(tr, w):
    """2x2 average-pool matrix for 2*tr input rows of width w (row-major flat).

    P[l, ro*wo + wc] = 0.25 for l = r*w + c with ro = r//2, wc = c//2.
    Built once on the host; 0.25 / 0.0 are exact in bf16.
    """
    wo = w // 2
    L, Lp = 2 * tr * w, tr * wo
    lidx = np.arange(L)
    pmat = np.zeros((L, Lp), np.float32)
    pmat[lidx, (lidx // (2 * w)) * wo + (lidx % w) // 2] = 0.25
    return jnp.asarray(pmat, jnp.bfloat16)


# ----------------------------------------------------------------------------
# Wrapper.
# ----------------------------------------------------------------------------
def transition_block_forward(x_nchw, params, *, eps=1e-5):
    gamma, beta, run_mean, run_var, gate, conv_w = (
        params["gamma"], params["beta"], params["running_mean"],
        params["running_var"], params["gate"], params["conv_w"],
    )
    N, C_in, H, W = x_nchw.shape
    C_out = conv_w.shape[0]
    assert H % 2 == 0 and W % 2 == 0
    Ho, Wo = H // 2, W // 2

    # Fold eval-mode BN (running stats) into per-channel f32 scale/shift; fold
    # the gate (applied after ReLU, so it commutes exactly) into the bf16 conv
    # weight.
    scale = (gamma / jnp.sqrt(run_var + eps)).astype(jnp.float32)
    shift = (beta - run_mean * scale).astype(jnp.float32)
    bn = jnp.stack([scale, shift]).reshape(2, C_in, 1)
    wmat = (conv_w.reshape(C_out, C_in) * gate.reshape(1, C_in)).astype(jnp.bfloat16)

    # NCHW consumed in its native dtype as (N, C_in, H*W): free contiguous
    # reshape, no extra XLA cast pass over HBM.
    x2d = x_nchw.reshape(N, C_in, H * W)
    out_dtype = x_nchw.dtype
    xb = jnp.dtype(out_dtype).itemsize

    TR = _pick_pooled_rows(Ho, Wo)
    L, Lp = 2 * TR * W, TR * Wo
    pmat = _pool_matrix(TR, W)

    # VMEM accounting: streaming tiles (x, out) are double-buffered; the small
    # resident operands (bn, w, pmat) are also counted 2x to stay honest about
    # Pallas' default multi-buffering.
    resident = 2 * (L * Lp * 2 + C_out * C_in * 2 + 2 * C_in * 4)
    per_img = C_in * L * xb + C_out * Lp * xb
    phys = _tpu_vmem_bytes()
    budget = min(int(phys * 0.35), 24 << 20)
    G = _pick_images_per_step(N, per_img, resident, budget)
    est = resident + 2 * G * per_img
    vmem_limit = int(min(max(2 * est, 32 << 20), int(phys * 0.75)))

    out_flat = pl.pallas_call(
        _fused_transition_kernel,
        out_shape=jax.ShapeDtypeStruct((N, C_out, Ho * Wo), out_dtype),
        grid=(N // G, Ho // TR),
        in_specs=[
            pl.BlockSpec((G, C_in, L), lambda b, r: (b, 0, r)),
            pl.BlockSpec((2, C_in, 1), lambda b, r: (0, 0, 0)),
            pl.BlockSpec((C_out, C_in), lambda b, r: (0, 0)),
            pl.BlockSpec((L, Lp), lambda b, r: (0, 0)),
        ],
        out_specs=pl.BlockSpec((G, C_out, Lp), lambda b, r: (b, 0, r)),
        compiler_params=pltpu.CompilerParams(
            dimension_semantics=("parallel", "parallel"),
            vmem_limit_bytes=vmem_limit),
    )(x2d, bn, wmat, pmat)

    # Free reshape back to NCHW pooled output (no transpose needed).
    return out_flat.reshape(N, C_out, Ho, Wo)


# ----------------------------------------------------------------------------
# Pure-JAX f32 reference (NCHW, mirrors the PyTorch forward in eval mode).
# ----------------------------------------------------------------------------
def _reference(x, p, eps=1e-5):
    g, b, m, v, gate, w = (p["gamma"], p["beta"], p["running_mean"],
                           p["running_var"], p["gate"], p["conv_w"])
    x = x.astype(jnp.float32)
    xh = (x - m[None, :, None, None]) / jnp.sqrt(v + eps)[None, :, None, None]
    xh = xh * g[None, :, None, None] + b[None, :, None, None]
    xh = gate[None, :, None, None] * jnp.maximum(xh, 0.0)
    C_out, C_in = w.shape[:2]
    y = jnp.einsum("nchw,oc->nohw", xh, w.reshape(C_out, C_in))
    N, _, H, W = y.shape
    return y.reshape(N, C_out, H // 2, 2, W // 2, 2).mean(axis=(3, 5))


if __name__ == "__main__":
    N, C_in, C_out, H, W = 2, 16, 8, 16, 16

    key = jax.random.PRNGKey(0)
    kx, kg, kb, km, kv, kw, kgate = jax.random.split(key, 7)

    # bf16 activations: exercises the bf16-I/O + bf16-MXU path.
    x = jax.random.normal(kx, (N, C_in, H, W), jnp.float32).astype(jnp.bfloat16)

    params = {
        # BatchNorm2d(in_planes): affine params + running stats (eval-mode BN).
        "gamma": jax.random.normal(kg, (C_in,), jnp.float32) * 0.1 + 1.0,
        "beta": jax.random.normal(kb, (C_in,), jnp.float32) * 0.1,
        "running_mean": jax.random.normal(km, (C_in,), jnp.float32) * 0.1,
        "running_var": jnp.abs(jax.random.normal(kv, (C_in,), jnp.float32)) * 0.5 + 0.5,
        # Gate(in_planes): module default is ones; use a non-trivial positive
        # scale so the gate multiply (folded into the weight) is exercised.
        "gate": jax.random.uniform(kgate, (C_in,), jnp.float32, 0.5, 1.5),
        # Conv2d(in_planes, out_planes, kernel_size=1, bias=False)
        "conv_w": jax.random.normal(kw, (C_out, C_in, 1, 1), jnp.float32)
        * (1.0 / jnp.sqrt(C_in)),
    }

    out = jax.block_until_ready(transition_block_forward(x, params))
    ref = _reference(x, params)

    assert out.shape == (N, C_out, H // 2, W // 2), out.shape
    # Tolerance accounts for bf16 matmul operands (f32 accumulation) + bf16 output.
    err = float(jnp.max(jnp.abs(out.astype(jnp.float32) - ref)))
    assert jnp.allclose(out.astype(jnp.float32), ref, rtol=5e-2, atol=1e-1), err

    print("KERNEL_OK")
</pallas_src>

<mosaic_0001>
module attributes {stable_mosaic.version = 11 : i64} {
  func.func @_fused_transition_kernel(%arg0: i32, %arg1: i32, %arg2: memref<2x16x256xbf16, #tpu.memory_space<vmem>>, %arg3: memref<2x16x1xf32, #tpu.memory_space<vmem>>, %arg4: memref<8x16xbf16, #tpu.memory_space<vmem>>, %arg5: memref<256x64xbf16, #tpu.memory_space<vmem>>, %arg6: memref<2x8x64xbf16, #tpu.memory_space<vmem>>) attributes {dimension_semantics = [#tpu.dimension_semantics<parallel>, #tpu.dimension_semantics<parallel>], iteration_bounds = array<i64: 1, 1>, scalar_prefetch = 0 : i64, scratch_operands = 0 : i64, tpu.core_type = #tpu.core_type<tc>, window_params = [{transform_indices = @transform_0, window_bounds = array<i64: 2, 16, 256>}, {pipeline_mode = #tpu.pipeline_mode<synchronous>, transform_indices = @transform_1, window_bounds = array<i64: 2, 16, 1>}, {pipeline_mode = #tpu.pipeline_mode<synchronous>, transform_indices = @transform_2, window_bounds = array<i64: 8, 16>}, {pipeline_mode = #tpu.pipeline_mode<synchronous>, transform_indices = @transform_3, window_bounds = array<i64: 256, 64>}, {transform_indices = @transform_4, window_bounds = array<i64: 2, 8, 64>}]} {
    %c0 = arith.constant 0 : index
    %c0_0 = arith.constant 0 : index
    %c0_1 = arith.constant 0 : index
    %0 = vector.load %arg3[%c0, %c0_0, %c0_1] : memref<2x16x1xf32, #tpu.memory_space<vmem>>, vector<1x16x1xf32>
    %1 = vector.shape_cast %0 : vector<1x16x1xf32> to vector<16x1xf32>
    %c1 = arith.constant 1 : index
    %c0_2 = arith.constant 0 : index
    %c0_3 = arith.constant 0 : index
    %2 = vector.load %arg3[%c1, %c0_2, %c0_3] : memref<2x16x1xf32, #tpu.memory_space<vmem>>, vector<1x16x1xf32>
    %3 = vector.shape_cast %2 : vector<1x16x1xf32> to vector<16x1xf32>
    %c0_4 = arith.constant 0 : index
    %c0_5 = arith.constant 0 : index
    %4 = vector.load %arg4[%c0_4, %c0_5] : memref<8x16xbf16, #tpu.memory_space<vmem>>, vector<8x16xbf16>
    %c0_6 = arith.constant 0 : index
    %c0_7 = arith.constant 0 : index
    %5 = vector.load %arg5[%c0_6, %c0_7] : memref<256x64xbf16, #tpu.memory_space<vmem>>, vector<256x64xbf16>
    %c0_8 = arith.constant 0 : index
    %c0_9 = arith.constant 0 : index
    %c0_10 = arith.constant 0 : index
    %6 = vector.load %arg2[%c0_8, %c0_9, %c0_10] : memref<2x16x256xbf16, #tpu.memory_space<vmem>>, vector<1x16x256xbf16>
    %7 = vector.shape_cast %6 : vector<1x16x256xbf16> to vector<16x256xbf16>
    %8 = arith.extf %7 : vector<16x256xbf16> to vector<16x256xf32>
    %9 = vector.broadcast %1 : vector<16x1xf32> to vector<16x256xf32>
    %10 = arith.mulf %8, %9 : vector<16x256xf32>
    %11 = vector.broadcast %3 : vector<16x1xf32> to vector<16x256xf32>
    %12 = arith.addf %10, %11 : vector<16x256xf32>
    %cst = arith.constant 0.000000e+00 : f32
    %13 = vector.broadcast %cst : f32 to vector<16x256xf32>
    %14 = arith.maximumf %12, %13 : vector<16x256xf32>
    %15 = arith.truncf %14 : vector<16x256xf32> to vector<16x256xbf16>
    %cst_11 = arith.constant dense<0.000000e+00> : vector<16x64xf32>
    %16 = tpu.matmul %15, %5, %cst_11 {dimension_numbers = #tpu.dot_dimension_numbers<[1], [0], [0], [1], [0, 0, 1, 1], [], []>} : vector<16x256xbf16>, vector<256x64xbf16>, vector<16x64xf32> -> vector<16x64xf32>
    %17 = arith.truncf %16 : vector<16x64xf32> to vector<16x64xbf16>
    %cst_12 = arith.constant dense<0.000000e+00> : vector<8x64xf32>
    %18 = tpu.matmul %4, %17, %cst_12 {dimension_numbers = #tpu.dot_dimension_numbers<[1], [0], [0], [1], [0, 0, 1, 1], [], []>} : vector<8x16xbf16>, vector<16x64xbf16>, vector<8x64xf32> -> vector<8x64xf32>
    %19 = arith.truncf %18 : vector<8x64xf32> to vector<8x64xbf16>
    %c0_13 = arith.constant 0 : index
    %c0_14 = arith.constant 0 : index
    %c0_15 = arith.constant 0 : index
    %20 = vector.load %arg6[%c0_13, %c0_14, %c0_15] : memref<2x8x64xbf16, #tpu.memory_space<vmem>>, vector<1x8x64xbf16>
    %21 = vector.shape_cast %20 : vector<1x8x64xbf16> to vector<8x64xbf16>
    %22 = vector.shape_cast %19 : vector<8x64xbf16> to vector<1x8x64xbf16>
    tpu.vector_store %arg6[%c0_13, %c0_14, %c0_15], %22 {strides = array<i32>} : memref<2x8x64xbf16, #tpu.memory_space<vmem>>, vector<1x8x64xbf16>,
    %c1_16 = arith.constant 1 : index
    %c0_17 = arith.constant 0 : index
    %c0_18 = arith.constant 0 : index
    %23 = vector.load %arg2[%c1_16, %c0_17, %c0_18] : memref<2x16x256xbf16, #tpu.memory_space<vmem>>, vector<1x16x256xbf16>
    %24 = vector.shape_cast %23 : vector<1x16x256xbf16> to vector<16x256xbf16>
    %25 = arith.extf %24 : vector<16x256xbf16> to vector<16x256xf32>
    %26 = vector.broadcast %1 : vector<16x1xf32> to vector<16x256xf32>
    %27 = arith.mulf %25, %26 : vector<16x256xf32>
    %28 = vector.broadcast %3 : vector<16x1xf32> to vector<16x256xf32>
    %29 = arith.addf %27, %28 : vector<16x256xf32>
    %cst_19 = arith.constant 0.000000e+00 : f32
    %30 = vector.broadcast %cst_19 : f32 to vector<16x256xf32>
    %31 = arith.maximumf %29, %30 : vector<16x256xf32>
    %32 = arith.truncf %31 : vector<16x256xf32> to vector<16x256xbf16>
    %cst_20 = arith.constant dense<0.000000e+00> : vector<16x64xf32>
    %33 = tpu.matmul %32, %5, %cst_20 {dimension_numbers = #tpu.dot_dimension_numbers<[1], [0], [0], [1], [0, 0, 1, 1], [], []>} : vector<16x256xbf16>, vector<256x64xbf16>, vector<16x64xf32> -> vector<16x64xf32>
    %34 = arith.truncf %33 : vector<16x64xf32> to vector<16x64xbf16>
    %cst_21 = arith.constant dense<0.000000e+00> : vector<8x64xf32>
    %35 = tpu.matmul %4, %34, %cst_21 {dimension_numbers = #tpu.dot_dimension_numbers<[1], [0], [0], [1], [0, 0, 1, 1], [], []>} : vector<8x16xbf16>, vector<16x64xbf16>, vector<8x64xf32> -> vector<8x64xf32>
    %36 = arith.truncf %35 : vector<8x64xf32> to vector<8x64xbf16>
    %c1_22 = arith.constant 1 : index
    %c0_23 = arith.constant 0 : index
    %c0_24 = arith.constant 0 : index
    %37 = vector.load %arg6[%c1_22, %c0_23, %c0_24] : memref<2x8x64xbf16, #tpu.memory_space<vmem>>, vector<1x8x64xbf16>
    %38 = vector.shape_cast %37 : vector<1x8x64xbf16> to vector<8x64xbf16>
    %39 = vector.shape_cast %36 : vector<8x64xbf16> to vector<1x8x64xbf16>
    tpu.vector_store %arg6[%c1_22, %c0_23, %c0_24], %39 {strides = array<i32>} : memref<2x8x64xbf16, #tpu.memory_space<vmem>>, vector<1x8x64xbf16>,
    return
  }
  func.func @transform_0(%arg0: i32, %arg1: i32) -> (i32, i32, i32) {
    %c0_i32 = arith.constant 0 : i32
    %c0_i32_0 = arith.constant 0 : i32
    return %arg0, %c0_i32, %arg1 : i32, i32, i32
  }
  func.func @transform_1(%arg0: i32, %arg1: i32) -> (i32, i32, i32) {
    %c0_i32 = arith.constant 0 : i32
    %c0_i32_0 = arith.constant 0 : i32
    %c0_i32_1 = arith.constant 0 : i32
    %c0_i32_2 = arith.constant 0 : i32
    return %c0_i32, %c0_i32_0, %c0_i32_1 : i32, i32, i32
  }
  func.func @transform_2(%arg0: i32, %arg1: i32) -> (i32, i32) {
    %c0_i32 = arith.constant 0 : i32
    %c0_i32_0 = arith.constant 0 : i32
    %c0_i32_1 = arith.constant 0 : i32
    return %c0_i32, %c0_i32_0 : i32, i32
  }
  func.func @transform_3(%arg0: i32, %arg1: i32) -> (i32, i32) {
    %c0_i32 = arith.constant 0 : i32
    %c0_i32_0 = arith.constant 0 : i32
    %c0_i32_1 = arith.constant 0 : i32
    return %c0_i32, %c0_i32_0 : i32, i32
  }
  func.func @transform_4(%arg0: i32, %arg1: i32) -> (i32, i32, i32) {
    %c0_i32 = arith.constant 0 : i32
    %c0_i32_0 = arith.constant 0 : i32
    return %arg0, %c0_i32, %arg1 : i32, i32, i32
  }
}

</mosaic_0001>

<bundles_post_ra>
// kernel: tpu_custom_call.1
= control target key start
LH: loop header
LB: loop body
LE: loop exit
PB: predicated region body
PF: predicated region fallthrough
CT: control target
= control target key end

     0   :  { %v532_v2 = vmov 0   ;;  %s709_s0 = inlined_call_operand.vmem [shape: bf16[2,16,256], index: 0, kind: input, shape index: {}]   ;;  %s710_s1 = inlined_call_operand.vmem [shape: f32[2,16,1], index: 1, kind: input, shape index: {}]   ;;  %s711_s2 = inlined_call_operand.vmem [shape: bf16[8,16], index: 2, kind: input, shape index: {}]   ;;  %s712_s3 = inlined_call_operand.vmem [shape: bf16[256,64], index: 3, kind: input, shape index: {}]   ;;  %s713_s4 = inlined_call_operand.hbm [shape: bf16[2,8,64], index: 4, kind: output, shape index: {}]  }
   0x1   :  { %v404_v0 = vld [vmem:[%s710_s1 + $0x10] sm:$0xff]  ;;  %v19_v1 = vld [vmem:[%s710_s1] sm:$0xff]  ;;  %493 = vset.pattern.permute.xlu1 %v532_v2  ;;  %492 = vset.pattern.permute.xlu0 %v532_v2  ;;  %v405_v3 = vld [vmem:[%s710_s1 + $0x18] sm:$0xff] }
   0x2   :  { %v20_v4 = vld [vmem:[%s710_s1 + $0x8] sm:$0xff]  ;;  %79 = vperm.xlu1 %493, %v404_v0   ;;  %65 = vperm.xlu0 %492, %v19_v1   ;;  %v578_v5 = vld [vmem:[%s712_s3 + $0x78] sm:$0xff]   ;;  %v589_v7 = vld [vmem:[%s712_s3 + $0x70] sm:$0xff]  }
   0x3   :  { %v583_v6 = vld [vmem:[%s712_s3 + $0x38] sm:$0xff]   ;;  %426 = vmatprep.subr.bf16.mxu0 %v578_v5  ;;  %v595_v8 = vld [vmem:[%s712_s3 + $0x30] sm:$0xff]   ;;  %v600_v9 = vld [vmem:[%s712_s3 + $0x68] sm:$0xff]  }
   0x4   :  { %427 = vmatpush3.bf16.msra.mxu0 %v583_v6  ;;  %v607_v10 = vld [vmem:[%s712_s3 + $0x28] sm:$0xff]   ;;  %v613_v11 = vld [vmem:[%s712_s3 + $0x60] sm:$0xff]   ;;  %v625_v13 = vld [vmem:[%s712_s3 + $0x58] sm:$0xff]  }
   0x5   :  { %428 = vmatprep.subr.bf16.mxu0 %v589_v7  ;;  %v619_v12 = vld [vmem:[%s712_s3 + $0x20] sm:$0xff]   ;;  %v631_v14 = vld [vmem:[%s712_s3 + $0x18] sm:$0xff]   ;;  %v637_v15 = vld [vmem:[%s712_s3 + $0x50] sm:$0xff]  }
   0x6   :  { %84 = vperm.xlu1 %493, %v405_v3   ;;  %70 = vperm.xlu0 %492, %v20_v4  }
   0x8   :  { %429 = vmatpush3.bf16.msra.mxu0 %v595_v8 }
   0x9   :  { %430 = vmatprep.subr.bf16.mxu0 %v600_v9 }
   0xc   :  { %431 = vmatpush3.bf16.msra.mxu0 %v607_v10 }
   0xd   :  { %432 = vmatprep.subr.bf16.mxu0 %v613_v11 }
  0x10   :  { %433 = vmatpush3.bf16.msra.mxu0 %v619_v12 }
  0x11   :  { %434 = vmatprep.subr.bf16.mxu0 %v625_v13 }
  0x12   :  { %9 = vsyncpa [#allocation3], 0  ;;  %v643_v16 = vld [vmem:[%s712_s3 + $0x10] sm:$0xff]   ;;  %v649_v17 = vld [vmem:[%s712_s3 + $0x48] sm:$0xff]   ;;  %v533_v1 = vmov 0.0   ;;  %vm534_vm0 = vmmov 0  }
  0x13   :  { %v655_v18 = vld [vmem:[%s712_s3 + $0x8] sm:$0xff]   ;;  %v661_v19 = vld [vmem:[%s712_s3 + $0x40] sm:$0xff]   ;;  %v423_v22 = vld [vmem:[%s709_s0 + $0x10] sm:$0xff]  ;;  %474 = vmatprep.subr.bf16.mxu1 %v533_v1  ;;  %476 = vmatprep.mubr.msk.bf16.mxu1 %vm534_vm0, %v533_v1  ;;  %vm235_vm1 = vcmask 130048   ;;  %vm280_vm2 = vcmask 519168  }
  0x14   :  { %435 = vmatpush3.bf16.msra.mxu0 %v631_v14  ;;  %v667_v20 = vld [vmem:[%s712_s3] sm:$0xff]   ;;  %v285_v24 = vunpack.c.l.bf16 %v423_v22  ;;  %v286_v25 = vunpack.c.h.bf16 %v423_v22  ;;  %v58_v26 = vld [vmem:[%s709_s0 + $0x8] sm:$0xff]  ;;  %v424_v27 = vld [vmem:[%s709_s0 + $0x18] sm:$0xff] }
  0x15   :  { %436 = vmatprep.subr.bf16.mxu0 %v637_v15  ;;  %v57_v21 = vld [vmem:[%s709_s0] sm:$0xff]  ;;  %v61_v31 = vunpack.c.l.bf16 %v58_v26  ;;  %v62_v32 = vunpack.c.h.bf16 %v58_v26  ;;  %v287_v33 = vunpack.c.l.bf16 %v424_v27  ;;  %v288_v38 = vunpack.c.h.bf16 %v424_v27 }
  0x16   :  { %v59_v23 = vunpack.c.l.bf16 %v57_v21  ;;  %v60_v28 = vunpack.c.h.bf16 %v57_v21 }
  0x18   :  { %437 = vmatpush3.bf16.msra.mxu0 %v643_v16 }
  0x19   :  { %438 = vmatprep.subr.bf16.mxu0 %v649_v17 }
  0x1c   :  { %439 = vmatpush3.bf16.msra.mxu0 %v655_v18 }
  0x1d   :  { %440 = vmatprep.subr.bf16.mxu0 %v661_v19 }
  0x20   :  { %441 = vmatpush3.bf16.msra.mxu0 %v667_v20 }
  0x21   :  { %480 = vmatprep.subr.bf16.mxu0 %v533_v1 }
  0x7d   :  { %v80_v29 = vpop.permute.xlu1 %79  ;;  %v66_v30 = vpop.permute.xlu0 %65 }
  0x7e   :  { %v73_v34 = vmul.f32 %v66_v30, %v59_v23  ;;  %v289_v35 = vmul.f32 %v285_v24, %v66_v30  ;;  %v290_v36 = vmul.f32 %v286_v25, %v66_v30  ;;  %v74_v37 = vmul.f32 %v66_v30, %v60_v28  ;;  %v24_v25 = vld [vmem:[%s711_s2] sm:$0xf]  ;;  %s535_s2 = smov [#allocation2]  }
  0x7f   :  { %s393_s9 = sshll.u32 %s535_s2, 4  ;;  %s394_s9 = int_to_ptr.vmem [resolvable:$true] %s393_s9 }
  0x80   :  { %v293_v39 = vadd.f32 %v289_v35, %v80_v29  ;;  %v294_v40 = vadd.f32 %v290_v36, %v80_v29  ;;  %v88_v42 = vadd.f32 %v80_v29, %v74_v37  ;;  %v87_v46 = vadd.f32 %v80_v29, %v73_v34  ;;  %s510_s10 = scalar_lea.vmem %s394_s9, 128  ;;  %p515_p1 = scmp.lt.s32.totalorder %s394_s9, %s394_s9 }
  0x81   :  { %v71_v41 = vpop.permute.xlu0 %70  ;;  %v85_v47 = vpop.permute.xlu1 %84  ;;  %p511_p0 = scmp.ne.s32.totalorder %s394_s9, %s510_s10  ;;  %p516_p2 = scmp.lt.s32.totalorder %s510_s10, %s510_s10 }
  0x82   :  { %v75_v43 = vmul.f32 %v71_v41, %v61_v31  ;;  %v76_v44 = vmul.f32 %v71_v41, %v62_v32  ;;  %v291_v45 = vmul.f32 %v287_v33, %v71_v41  ;;  %v292_v48 = vmul.f32 %v288_v38, %v71_v41 }
  0x83   :  { %v297_v52 = vmax.f32 %v293_v39, 0.0  ;;  %v92_v54 = vmax.f32 %v88_v42, 0.0  ;;  %v91_v57 = vmax.f32 %v87_v46, 0.0  ;;  %v298_v59 = vmax.f32 %v294_v40, 0.0  ;;  %p517_p3 = por %p516_p2, %p515_p1 }
  0x84   :  { %v89_v49 = vadd.f32 %v85_v47, %v75_v43  ;;  %v295_v50 = vadd.f32 %v291_v45, %v85_v47  ;;  %v90_v51 = vadd.f32 %v85_v47, %v76_v44  ;;  %v296_v53 = vadd.f32 %v292_v48, %v85_v47 }
  0x85   :  { %p518_p4 = pnand %p517_p3, %p511_p0 }
  0x86   :  { %v299_v55 = vmax.f32 %v295_v50, 0.0  ;;  %v94_v56 = vmax.f32 %v90_v51, 0.0  ;;  %v93_v58 = vmax.f32 %v89_v49, 0.0  ;;  %v300_v60 = vmax.f32 %v296_v53, 0.0 }
  0x88   :  { %v96_v61 = vpack.c.bf16 %v94_v56, %v92_v54  ;;  %v95_v62 = vpack.c.bf16 %v93_v58, %v91_v57  ;;  %v301_v63 = vpack.c.bf16 %v299_v55, %v297_v52  ;;  %v302_v0 = vpack.c.bf16 %v300_v60, %v298_v59 }
  0x8a   :  { %225 = vmatprep.mubr.bf16.mxu0 %v96_v61 }
  0x8b   :  { %226 = vmatmul.mubr.bf16.vlgmr.msra.gmra.mxu0 %v95_v62 }
  0x8c   :  { %482 = vmatprep.mubr.msk.bf16.mxu0 %vm534_vm0, %v533_v1 }
 0x14b   :  { %v442_v2 = vpop.f32.mrf.mxu0 }
 0x14d   :  { %v443_v3 = vpop.f32.mrf.mxu0 }
 0x14e   :  { %v444_v22 = vadd.f32 %v443_v3, %v442_v2 }
 0x14f   :  { %v445_v4 = vpop.f32.mrf.mxu0 }
 0x151   :  { %v446_v21 = vpop.f32.mrf.mxu0 }
 0x152   :  { %v447_v23 = vadd.f32 %v446_v21, %v445_v4 }
 0x154   :  { %v234_v24 = vpack.c.bf16 %v447_v23, %v444_v22 }
 0x156   :  { %475 = vmatpush3.bf16.msra.mxu1 %v234_v24 }
 0x157   :  { %450 = vmatprep.subr.bf16.mxu1 %v578_v5 }
 0x159   :  { %477 = vmatmul.mubr.msk.bf16.vlgmr.msra.gmra.mxu1 %vm235_vm1, %v24_v25 }
 0x15a   :  { %451 = vmatpush3.bf16.msra.mxu1 %v583_v6  ;;  %335 = vmatprep.mubr.bf16.mxu1 %v302_v0 }
 0x15b   :  { %452 = vmatprep.subr.bf16.mxu1 %v589_v7 }
 0x15e   :  { %453 = vmatpush3.bf16.msra.mxu1 %v595_v8 }
 0x15f   :  { %454 = vmatprep.subr.bf16.mxu1 %v600_v9 }
 0x162   :  { %455 = vmatpush3.bf16.msra.mxu1 %v607_v10 }
 0x163   :  { %456 = vmatprep.subr.bf16.mxu1 %v613_v11 }
 0x166   :  { %457 = vmatpush3.bf16.msra.mxu1 %v619_v12 }
 0x167   :  { %458 = vmatprep.subr.bf16.mxu1 %v625_v13 }
 0x16a   :  { %459 = vmatpush3.bf16.msra.mxu1 %v631_v14 }
 0x16b   :  { %460 = vmatprep.subr.bf16.mxu1 %v637_v15 }
 0x16e   :  { %461 = vmatpush3.bf16.msra.mxu1 %v643_v16 }
 0x16f   :  { %462 = vmatprep.subr.bf16.mxu1 %v649_v17 }
 0x172   :  { %463 = vmatpush3.bf16.msra.mxu1 %v655_v18 }
 0x173   :  { %464 = vmatprep.subr.bf16.mxu1 %v661_v19 }
 0x176   :  { %465 = vmatpush3.bf16.msra.mxu1 %v667_v20 }
 0x179   :  { %336 = vmatmul.mubr.bf16.vlgmr.msra.gmra.mxu1 %v301_v63 }
 0x219   :  { %v273_v5 = vpop.f32.mrf.mxu1 }
 0x21a   :  { %v279_v6 = vpack.c.bf16 %v273_v5, %v273_v5 }
 0x21b   :  { %v478_v7 = vpop.f32.mrf.mxu1 }
 0x21c   :  { %281 = vst.msk [vmem:[#allocation2] sm:$0xf] %vm280_vm2, %v279_v6 }
 0x21d   :  { %v276_v8 = vpop.f32.mrf.mxu1 }
 0x21f   :  { %v479_v9 = vpop.f32.mrf.mxu1 }
 0x239   :  { %v466_v10 = vpop.f32.mrf.mxu1 }
 0x23b   :  { %v467_v11 = vpop.f32.mrf.mxu1 }
 0x23c   :  { %v468_v14 = vadd.f32 %v467_v11, %v466_v10 }
 0x23d   :  { %v469_v12 = vpop.f32.mrf.mxu1 }
 0x23f   :  { %v470_v13 = vpop.f32.mrf.mxu1 }
 0x240   :  { %v471_v15 = vadd.f32 %v470_v13, %v469_v12 }
 0x242   :  { %v344_v16 = vpack.c.bf16 %v471_v15, %v468_v14 }
 0x244   :  { %481 = vmatpush3.bf16.msra.mxu0 %v344_v16 }
 0x247   :  { %483 = vmatmul.mubr.msk.bf16.vlgmr.msra.gmra.mxu0 %vm235_vm1, %v24_v25 }
 0x307   :  { %v379_v17 = vpop.f32.mrf.mxu0 }
 0x308   :  { %v385_v18 = vpack.c.bf16 %v379_v17, %v379_v17 }
 0x309   :  { %v484_v19 = vpop.f32.mrf.mxu0 }
 0x30a   :  { %387 = vst.msk [vmem:[#allocation2 + $0x4] sm:$0xf] %vm280_vm2, %v385_v18 }
 0x30b   :  { %v382_v20 = vpop.f32.mrf.mxu0 }
 0x30c   :  { %521 = shalt.err (!%p518_p4)
}
 0x30d   :  { %s536_s11 = smov 64   ;;  %s537_s12 = smov 4   ;;  %v485_v26 = vpop.f32.mrf.mxu0 }
 0x30e   :  { %399 = dma.vmem_to_hbm [thread:$0]  %s394_s9, 128, %s713_s4, [#allocation3], %s536_s11, %s536_s11, %s537_s12  }
 0x30f   :  { %530 = dma.done.wait [#allocation3], 128  }
 0x310   :  { %531 = vsyncadd [#allocation3], 4294967168 }
 0x311   :  { %403 = vsyncpa [#allocation3], 1 }

</bundles_post_ra>
